<compile_context>
chip_gen: v7x
topology: tpu7x:2x2x1
jax: 0.10.0
libtpu: 0.0.40
codegen_flags: <defaults>
</compile_context>

<pallas_src>
import functools

import jax
import jax.numpy as jnp
from jax.experimental import pallas as pl
from jax.experimental.pallas import tpu as pltpu


def _round_up(x, m):
    return (x + m - 1) // m * m


def _cdiv(a, b):
    return -(-a // b)


def _vmem_limit_bytes():
    """Per-generation scoped-VMEM limit: half of physical VMEM, conservative fallback."""
    try:
        info = pltpu.get_tpu_info()
        cap = int(getattr(info, "vmem_capacity_bytes"))
        return max(32 * 1024 * 1024, min(cap // 2, 96 * 1024 * 1024))
    except Exception:
        return 32 * 1024 * 1024  # safe on every generation (v7x physical VMEM is 64 MiB)


def _task_adaptive_loss_kernel(pred_ref, tgt_ref, w_ref, out_ref, acc_ref,
                               *, n_rows, tile_n, blocks_per_slice):
    i = pl.program_id(1)

    @pl.when(i == 0)
    def _init():
        acc_ref[...] = jnp.zeros_like(acc_ref)

    # Unclamped global row-block index: overhang blocks of the last slice map past the end,
    # so every one of their rows fails the `rows < n_rows` check and contributes exactly 0
    # (the index_map clamps the DMA itself in-bounds).
    blk = pl.program_id(0) * blocks_per_slice + i
    row0 = blk * tile_n

    pred = pred_ref[...].astype(jnp.float32)      # (tile_n, C)
    tgt = tgt_ref[...]                            # (tile_n, 1) int32 (garbage in ragged tail)
    w = w_ref[...]                                # (tile_n, 1) f32  = weight[target]

    tn, c = pred.shape
    col = jax.lax.broadcasted_iota(jnp.int32, (1, c), 1)   # (1, C) row; broadcast vs target col
    hit = col == tgt                                       # (tile_n, C) one-hot mask

    # Numerically-stable cross entropy; row_max cancels between lse and the target logit.
    row_max = jnp.max(pred, axis=-1, keepdims=True)
    shifted = pred - row_max
    log_sum = jnp.log(jnp.sum(jnp.exp(shifted), axis=-1, keepdims=True))
    tgt_shift = jnp.sum(jnp.where(hit, shifted, 0.0), axis=-1, keepdims=True)

    rows = row0 + jax.lax.broadcasted_iota(jnp.int32, (tn, 1), 0)
    valid = rows < n_rows                                  # masks ragged tail + overhang blocks
    weighted = jnp.where(valid, (log_sum - tgt_shift) * w, 0.0)

    acc_ref[...] += jnp.sum(weighted, axis=0, keepdims=True)

    @pl.when(i == pl.num_programs(1) - 1)
    def _finalize():
        # Per-slice partial sum, broadcast over a lane-dense (1, 8, 128) output block.
        out_ref[...] = jnp.broadcast_to(acc_ref[...], out_ref.shape)


def task_adaptive_loss(pred, target, weight, *, tile_rows=None):
    """pred: (N, C) float (any float dtype), target: (N,) int, weight: (C,) float -> f32 scalar."""
    n, c = pred.shape
    itemsize = jnp.dtype(pred.dtype).itemsize
    vmem_limit = _vmem_limit_bytes()

    target2d = target.astype(jnp.int32).reshape(n, 1)
    # Per-row weight gather done once in the wrapper (cheap XLA gather on N elements).
    w_row = weight.astype(jnp.float32)[target.astype(jnp.int32)].reshape(n, 1)

    # --- batch split across TensorCores (2x on v7x; a no-op loop on 1-TC parts) -------------
    num_slices = 2 if n >= 32 else 1
    rows_per_slice = _cdiv(n, num_slices)

    # --- row tile sized by bytes: 2x input buffers + ~16 B/elem of f32 temporaries ----------
    if n < 8:
        tile_n = n                                # block dim == full array dim is always legal
    else:
        cap_rows = max(8, (rows_per_slice // 8) * 8)   # keep blocks within the array extent
        if tile_rows is not None:
            tile_n = max(8, _round_up(tile_rows, 8))
        else:
            bytes_per_row = c * (2 * itemsize + 16) + 64
            tile_n = (vmem_limit // 2) // bytes_per_row
            tile_n = max(8, min((tile_n // 8) * 8, 8192))
        tile_n = min(tile_n, cap_rows)

    total_blocks = _cdiv(n, tile_n)
    blocks_per_slice = _cdiv(total_blocks, num_slices)
    grid = (num_slices, blocks_per_slice)

    if num_slices * blocks_per_slice != total_blocks:
        # Last slice has overhang steps: clamp the DMA block index in-bounds (duplicated data
        # is fully masked in-kernel via the global row index).
        def row_block(s, i):
            return (jnp.minimum(s * blocks_per_slice + i, total_blocks - 1), 0)
    else:
        def row_block(s, i):
            return (s * blocks_per_slice + i, 0)

    kernel = functools.partial(
        _task_adaptive_loss_kernel,
        n_rows=n, tile_n=tile_n, blocks_per_slice=blocks_per_slice)

    cost = pl.CostEstimate(
        flops=8 * n * c,
        transcendentals=n * c,
        bytes_accessed=n * c * itemsize + 2 * n * 4 + num_slices * 8 * 128 * 4,
    )

    partials = pl.pallas_call(
        kernel,
        out_shape=jax.ShapeDtypeStruct((num_slices, 8, 128), jnp.float32),
        grid=grid,
        in_specs=[
            pl.BlockSpec((tile_n, c), row_block),   # pred: pipelined row tiles, full class width
            pl.BlockSpec((tile_n, 1), row_block),   # target: pipelined row tiles
            pl.BlockSpec((tile_n, 1), row_block),   # weight[target]: pipelined row tiles
        ],
        out_specs=pl.BlockSpec((1, 8, 128), lambda s, i: (s, 0, 0)),  # per-slice partial sum
        scratch_shapes=[pltpu.VMEM((1, 1), jnp.float32)],             # per-core running sum
        compiler_params=pltpu.CompilerParams(
            dimension_semantics=("parallel", "arbitrary"),
            vmem_limit_bytes=vmem_limit,
        ),
        cost_estimate=cost,
    )(pred, target2d, w_row)

    return jnp.sum(partials[:, 0, 0]) / n


def _reference(pred, target, weight):
    logp = jax.nn.log_softmax(pred.astype(jnp.float32), axis=-1)
    ce = -jnp.take_along_axis(logp, target[:, None], axis=-1)[:, 0]
    return jnp.mean(ce * weight.astype(jnp.float32)[target])


if __name__ == "__main__":
    key = jax.random.PRNGKey(0)
    k1, k2, k3, k4, k5, k6, k7, k8 = jax.random.split(key, 8)

    # Case 1: nominal small config (batch=8, num_classes=32), f32 logits, weight = ones
    # (nn.Parameter(torch.ones(num_classes)) deterministic init).
    pred = jax.random.normal(k1, (8, 32), dtype=jnp.float32)
    target = jax.random.randint(k2, (8,), 0, 32, dtype=jnp.int32)
    weight = jnp.ones((32,), dtype=jnp.float32)
    out = task_adaptive_loss(pred, target, weight)
    jax.block_until_ready(out)
    assert jnp.allclose(out, _reference(pred, target, weight), atol=1e-5, rtol=1e-5), out

    # Case 2: ragged batch + non-128 class count + bf16 logits (no padding anywhere).
    pred2 = jax.random.normal(k3, (10, 20), dtype=jnp.bfloat16)
    target2 = jax.random.randint(k4, (10,), 0, 20, dtype=jnp.int32)
    weight2 = jax.random.uniform(k5, (20,), dtype=jnp.float32, minval=0.5, maxval=1.5)
    out2 = task_adaptive_loss(pred2, target2, weight2)
    jax.block_until_ready(out2)
    assert jnp.allclose(out2, _reference(pred2, target2, weight2), atol=1e-4, rtol=1e-4), out2

    # Case 3: forced 16-row tiles over 48 rows -> 2 slices x 2 steps with an overhang block
    # (exercises the per-core accumulators, the clamped index_map and the row masking).
    pred3 = jax.random.normal(k6, (48, 32), dtype=jnp.float32)
    target3 = jax.random.randint(k2, (48,), 0, 32, dtype=jnp.int32)
    weight3 = jnp.ones((32,), dtype=jnp.float32)
    out3 = task_adaptive_loss(pred3, target3, weight3, tile_rows=16)
    jax.block_until_ready(out3)
    assert jnp.allclose(out3, _reference(pred3, target3, weight3), atol=1e-5, rtol=1e-5), out3

    # Case 4: default tiling with ragged rows + non-128 classes + random weights
    # (2 slices, ragged last block, overhang block on the second slice).
    pred4 = jax.random.normal(k7, (100, 200), dtype=jnp.float32)
    target4 = jax.random.randint(k8, (100,), 0, 200, dtype=jnp.int32)
    weight4 = jax.random.uniform(k5, (200,), dtype=jnp.float32, minval=0.5, maxval=1.5)
    out4 = task_adaptive_loss(pred4, target4, weight4)
    jax.block_until_ready(out4)
    assert jnp.allclose(out4, _reference(pred4, target4, weight4), atol=1e-4, rtol=1e-4), out4

    print("KERNEL_OK")
</pallas_src>

<mosaic_0001>
module attributes {stable_mosaic.version = 11 : i64} {
  func.func @_task_adaptive_loss_kernel(%arg0: i32, %arg1: i32, %arg2: memref<8x32xf32, #tpu.memory_space<vmem>>, %arg3: memref<8x1xi32, #tpu.memory_space<vmem>>, %arg4: memref<8x1xf32, #tpu.memory_space<vmem>>, %arg5: memref<1x8x128xf32, #tpu.memory_space<vmem>>, %arg6: memref<1x1xf32, #tpu.memory_space<vmem>>) attributes {dimension_semantics = [#tpu.dimension_semantics<parallel>, #tpu.dimension_semantics<arbitrary>], iteration_bounds = array<i64: 1, 1>, scalar_prefetch = 0 : i64, scratch_operands = 1 : i64, tpu.core_type = #tpu.core_type<tc>, window_params = [{transform_indices = @transform_0, window_bounds = array<i64: 8, 32>}, {transform_indices = @transform_1, window_bounds = array<i64: 8, 1>}, {transform_indices = @transform_2, window_bounds = array<i64: 8, 1>}, {transform_indices = @transform_3, window_bounds = array<i64: 1, 8, 128>}]} {
    %c0_i32 = arith.constant 0 : i32
    %0 = arith.cmpi eq, %arg1, %c0_i32 : i32
    %1 = arith.extui %0 : i1 to i32
    %c0_i32_0 = arith.constant 0 : i32
    %2 = arith.cmpi ne, %1, %c0_i32_0 : i32
    scf.if %2 {
      %cst_18 = arith.constant 0.000000e+00 : f32
      %42 = vector.broadcast %cst_18 : f32 to vector<1x1xf32>
      %c0_19 = arith.constant 0 : index
      %c0_20 = arith.constant 0 : index
      %43 = vector.load %arg6[%c0_19, %c0_20] : memref<1x1xf32, #tpu.memory_space<vmem>>, vector<1x1xf32>
      tpu.vector_store %arg6[%c0_19, %c0_20], %42 {strides = array<i32>} : memref<1x1xf32, #tpu.memory_space<vmem>>, vector<1x1xf32>,
    } else {
    }
    %c1_i32 = arith.constant 1 : i32
    %3 = arith.muli %arg0, %c1_i32 : i32
    %4 = arith.addi %3, %arg1 : i32
    %c8_i32 = arith.constant 8 : i32
    %5 = arith.muli %4, %c8_i32 : i32
    %c0 = arith.constant 0 : index
    %c0_1 = arith.constant 0 : index
    %6 = vector.load %arg2[%c0, %c0_1] : memref<8x32xf32, #tpu.memory_space<vmem>>, vector<8x32xf32>
    %c0_2 = arith.constant 0 : index
    %c0_3 = arith.constant 0 : index
    %7 = vector.load %arg3[%c0_2, %c0_3] : memref<8x1xi32, #tpu.memory_space<vmem>>, vector<8x1xi32>
    %c0_4 = arith.constant 0 : index
    %c0_5 = arith.constant 0 : index
    %8 = vector.load %arg4[%c0_4, %c0_5] : memref<8x1xf32, #tpu.memory_space<vmem>>, vector<8x1xf32>
    %9 = tpu.iota {dimensions = array<i32: 1>} : vector<1x32xi32>
    %10 = vector.broadcast %9 : vector<1x32xi32> to vector<8x32xi32>
    %11 = vector.broadcast %7 : vector<8x1xi32> to vector<8x32xi32>
    %12 = arith.cmpi eq, %10, %11 : vector<8x32xi32>
    %cst = arith.constant dense<0xFF800000> : vector<8xf32>
    %13 = vector.multi_reduction <maximumf>, %6, %cst [1] : vector<8x32xf32> to vector<8xf32>
    %14 = vector.shape_cast %13 : vector<8xf32> to vector<8x1xf32>
    %15 = vector.broadcast %14 : vector<8x1xf32> to vector<8x32xf32>
    %16 = arith.subf %6, %15 : vector<8x32xf32>
    %17 = math.exp %16 : vector<8x32xf32>
    %cst_6 = arith.constant dense<0.000000e+00> : vector<8xf32>
    %18 = vector.multi_reduction <add>, %17, %cst_6 [1] : vector<8x32xf32> to vector<8xf32>
    %19 = vector.shape_cast %18 : vector<8xf32> to vector<8x1xf32>
    %20 = math.log %19 : vector<8x1xf32>
    %cst_7 = arith.constant 0.000000e+00 : f32
    %21 = vector.broadcast %cst_7 : f32 to vector<8x32xf32>
    %22 = arith.select %12, %16, %21 : vector<8x32xi1>, vector<8x32xf32>
    %cst_8 = arith.constant dense<0.000000e+00> : vector<8xf32>
    %23 = vector.multi_reduction <add>, %22, %cst_8 [1] : vector<8x32xf32> to vector<8xf32>
    %24 = vector.shape_cast %23 : vector<8xf32> to vector<8x1xf32>
    %25 = tpu.iota {dimensions = array<i32: 0>} : vector<8x1xi32>
    %26 = vector.broadcast %5 : i32 to vector<8x1xi32>
    %27 = arith.addi %26, %25 : vector<8x1xi32>
    %c8_i32_9 = arith.constant 8 : i32
    %28 = vector.broadcast %c8_i32_9 : i32 to vector<8x1xi32>
    %29 = arith.cmpi slt, %27, %28 : vector<8x1xi32>
    %30 = arith.subf %20, %24 : vector<8x1xf32>
    %31 = arith.mulf %30, %8 : vector<8x1xf32>
    %cst_10 = arith.constant 0.000000e+00 : f32
    %32 = vector.broadcast %cst_10 : f32 to vector<8x1xf32>
    %33 = arith.select %29, %31, %32 : vector<8x1xi1>, vector<8x1xf32>
    %c0_11 = arith.constant 0 : index
    %c0_12 = arith.constant 0 : index
    %34 = vector.load %arg6[%c0_11, %c0_12] : memref<1x1xf32, #tpu.memory_space<vmem>>, vector<1x1xf32>
    %cst_13 = arith.constant dense<0.000000e+00> : vector<1xf32>
    %35 = vector.multi_reduction <add>, %33, %cst_13 [0] : vector<8x1xf32> to vector<1xf32>
    %36 = vector.shape_cast %35 : vector<1xf32> to vector<1x1xf32>
    %37 = arith.addf %34, %36 : vector<1x1xf32>
    %c0_14 = arith.constant 0 : index
    %c0_15 = arith.constant 0 : index
    %38 = vector.load %arg6[%c0_14, %c0_15] : memref<1x1xf32, #tpu.memory_space<vmem>>, vector<1x1xf32>
    tpu.vector_store %arg6[%c0_14, %c0_15], %37 {strides = array<i32>} : memref<1x1xf32, #tpu.memory_space<vmem>>, vector<1x1xf32>,
    %c0_i32_16 = arith.constant 0 : i32
    %39 = arith.cmpi eq, %arg1, %c0_i32_16 : i32
    %40 = arith.extui %39 : i1 to i32
    %c0_i32_17 = arith.constant 0 : i32
    %41 = arith.cmpi ne, %40, %c0_i32_17 : i32
    scf.if %41 {
      %c0_18 = arith.constant 0 : index
      %c0_19 = arith.constant 0 : index
      %42 = vector.load %arg6[%c0_18, %c0_19] : memref<1x1xf32, #tpu.memory_space<vmem>>, vector<1x1xf32>
      %43 = vector.shape_cast %42 : vector<1x1xf32> to vector<1x1x1xf32>
      %44 = vector.broadcast %43 : vector<1x1x1xf32> to vector<1x8x128xf32>
      %c0_20 = arith.constant 0 : index
      %c0_21 = arith.constant 0 : index
      %c0_22 = arith.constant 0 : index
      %45 = vector.load %arg5[%c0_20, %c0_21, %c0_22] : memref<1x8x128xf32, #tpu.memory_space<vmem>>, vector<1x8x128xf32>
      tpu.vector_store %arg5[%c0_20, %c0_21, %c0_22], %44 {strides = array<i32>} : memref<1x8x128xf32, #tpu.memory_space<vmem>>, vector<1x8x128xf32>,
    } else {
    }
    return
  }
  func.func @transform_0(%arg0: i32, %arg1: i32) -> (i32, i32) {
    %c1_i32 = arith.constant 1 : i32
    %0 = arith.muli %arg0, %c1_i32 : i32
    %1 = arith.addi %0, %arg1 : i32
    %c0_i32 = arith.constant 0 : i32
    %c0_i32_0 = arith.constant 0 : i32
    return %1, %c0_i32 : i32, i32
  }
  func.func @transform_1(%arg0: i32, %arg1: i32) -> (i32, i32) {
    %c1_i32 = arith.constant 1 : i32
    %0 = arith.muli %arg0, %c1_i32 : i32
    %1 = arith.addi %0, %arg1 : i32
    %c0_i32 = arith.constant 0 : i32
    %c0_i32_0 = arith.constant 0 : i32
    return %1, %c0_i32 : i32, i32
  }
  func.func @transform_2(%arg0: i32, %arg1: i32) -> (i32, i32) {
    %c1_i32 = arith.constant 1 : i32
    %0 = arith.muli %arg0, %c1_i32 : i32
    %1 = arith.addi %0, %arg1 : i32
    %c0_i32 = arith.constant 0 : i32
    %c0_i32_0 = arith.constant 0 : i32
    return %1, %c0_i32 : i32, i32
  }
  func.func @transform_3(%arg0: i32, %arg1: i32) -> (i32, i32, i32) {
    %c0_i32 = arith.constant 0 : i32
    %c0_i32_0 = arith.constant 0 : i32
    %c0_i32_1 = arith.constant 0 : i32
    return %arg0, %c0_i32, %c0_i32_0 : i32, i32, i32
  }
}

</mosaic_0001>

<bundles_post_ra>
// kernel: tpu_custom_call.1
= control target key start
LH: loop header
LB: loop body
LE: loop exit
PB: predicated region body
PF: predicated region fallthrough
CT: control target
= control target key end

     0   :  { %vm83_vm0 = vcmask 261120   ;;  %s248_s0 = inlined_call_operand.vmem [shape: f32[8,32], index: 0, kind: input, shape index: {}]   ;;  %s249_s1 = inlined_call_operand.vmem [shape: s32[8,1], index: 1, kind: input, shape index: {}]   ;;  %s250_s2 = inlined_call_operand.vmem [shape: f32[8,1], index: 2, kind: input, shape index: {}]   ;;  %s251_s3 = inlined_call_operand.hbm [shape: f32[1,8,128], index: 3, kind: output, shape index: {}]  }
   0x1   :  { %v74_v0 = vld [vmem:[%s248_s0] sm:$0xff] }
   0x2   :  { %8 = vsyncpa [#allocation4], 0  ;;  %v84_v1 = vsel %vm83_vm0, %v74_v0, -inf  ;;  %v199_v2 = vmov 0   ;;  %v75_v3 = vld [vmem:[%s249_s1] sm:$0xff]  ;;  %v77_v7 = vlaneseq  ;;  %vm70_vm2 = vcmask 0  }
   0x3   :  { %169 = vset.pattern.permute.xlu0 %v199_v2  ;;  %170 = vset.pattern.permute.xlu1 %v199_v2  ;;  %v200_v14 = vmov 0.0   ;;  %v76_v18 = vld [vmem:[%s250_s2] sm:$0xff]  ;;  %vm108_vm3 = vcmask 7168   ;;  %s201_s16 = smov [#allocation3]  }
   0x4   :  { %85 = vmax.xlane.f32.xlu0 %v84_v1  ;;  %v78_v8 = vand.u32 127, %v77_v7  ;;  %71 = vst.msk [vmem:[#allocation2] sm:$0x1] %vm70_vm2, %v200_v14  ;;  %s139_s17 = sshll.u32 %s201_s16, 4  ;;  %s140_s17 = int_to_ptr.vmem [resolvable:$true] %s139_s17 }
   0x5   :  { %s175_s2 = scalar_lea.vmem %s140_s17, 128  ;;  %p180_p1 = scmp.lt.s32.totalorder %s140_s17, %s140_s17 }
   0x6   :  { %p176_p0 = scmp.ne.s32.totalorder %s140_s17, %s175_s2  ;;  %p181_p2 = scmp.lt.s32.totalorder %s175_s2, %s175_s2 }
   0x8   :  { %p182_p3 = por %p181_p2, %p180_p1 }
   0xa   :  { %p183_p4 = pnand %p182_p3, %p176_p0 }
   0xb   :  { %v107_v28 = vld [vmem:[#allocation2] sm:$0x1] }
  0x1a   :  { %80 = vperm.xlu0 %169, %v75_v3  }
  0x91   :  { %v86_v4 = vpop.xlane.xlu0 %85 }
  0x92   :  { %v87_v5 = vsub.f32 %v74_v0, %v86_v4 }
  0x94   :  { %v88_v6 = vmul.f32 1.442695, %v87_v5 }
  0x96   :  { %171 = vpow2.f32 %v88_v6 }
  0x99   :  { %v81_v9 = vpop.permute.xlu0 %80 }
  0x9a   :  { %vm82_vm1 = vcmp.eq.s32.totalorder %v78_v8, %v81_v9 }
  0x9b   :  { %v95_v12 = vsel %vm82_vm1, %v87_v5, 0.0 }
  0x9c   :  { %v96_v13 = vsel %vm83_vm0, %v95_v12, 0.0 }
  0xa0   :  { %v172_v10 = vpop.eup %171 }
  0xa1   :  { %v90_v11 = vsel %vm83_vm0, %v172_v10, 0.0 }
  0xa2   :  { %91 = vadd.xlane.f32.xlu1 %v90_v11 }
  0xa6   :  { %97 = vadd.xlane.f32.xlu1 %v96_v13 }
 0x12f   :  { %v92_v15 = vpop.xlane.xlu1 %91 }
 0x130   :  { %173 = vlog2.f32 %v92_v15 }
 0x133   :  { %v98_v19 = vpop.xlane.xlu1 %97 }
 0x13a   :  { %v174_v16 = vpop.eup %173 }
 0x13b   :  { %v94_v17 = vmul.f32 0.6931472, %v174_v16 }
 0x13d   :  { %v104_v20 = vsub.f32 %v94_v17, %v98_v19 }
 0x13f   :  { %v105_v21 = vmul.f32 %v104_v20, %v76_v18 }
 0x141   :  { %v109_v22 = vsel %vm108_vm3, %v105_v21, 0.0 }
 0x142   :  { %v110_v23 = vrot.slane %v109_v22, 4 }
 0x144   :  { %v111_v24 = vadd.f32 %v110_v23, %v109_v22 }
 0x146   :  { %v112_v25 = vrot.slane %v111_v24, 2 }
 0x148   :  { %v113_v26 = vadd.f32 %v112_v25, %v111_v24 }
 0x14a   :  { %v114_v27 = vrot.slane %v113_v26, 1 }
 0x14c   :  { %v115_v29 = vadd.f32 %v114_v27, %v113_v26 }
 0x14e   :  { %v116_v30 = vadd.f32 %v115_v29, %v107_v28 }
 0x150   :  { %118 = vst.msk [vmem:[#allocation2] sm:$0x1] %vm70_vm2, %v116_v30 }
 0x157   :  { %v165_v31 = vld [vmem:[#allocation2] ss:$0 sm:$0xff] }
 0x158   :  { %129 = vperm.xlu1 %170, %v165_v31  }
 0x1d7   :  { %v130_v32 = vpop.permute.xlu1 %129 }
 0x1d8   :  { %132 = vst [vmem:[#allocation3] sm:$0xff] %v130_v32 }
 0x1d9   :  { %186 = shalt.err (!%p183_p4)
}
 0x1da   :  { %s187_s20 = scalar_lea.hbm %s251_s3, 128 }
 0x1db   :  { %p188_p5 = scmp.ne.s32.totalorder %s251_s3, %s187_s20  ;;  %p191_p6 = scmp.lt.u32.totalorder %s187_s20, %s251_s3 }
 0x1dd   :  { %p193_p7 = pnand %p191_p6, %p188_p5 }
 0x1df   :  { %196 = shalt.err (!%p193_p7)
}
 0x1e0   :  { %142 = dma.vmem_to_hbm [thread:$0]  %s140_s17, 128, %s251_s3, [#allocation4]  }
 0x1e1   :  { %197 = dma.done.wait [#allocation4], 128  }
 0x1e2   :  { %198 = vsyncadd [#allocation4], 4294967168 }
 0x1e3   :  { %146 = vsyncpa [#allocation4], 1 }

</bundles_post_ra>
